<compile_context>
chip_gen: v7x
topology: tpu7x:2x2x1
jax: 0.10.0
libtpu: 0.0.40
codegen_flags: <defaults>
</compile_context>

<pallas_src>
import functools
import math

import jax
import jax.numpy as jnp
from jax.experimental import pallas as pl
from jax.experimental.pallas import tpu as pltpu


def _round_up(n, m):
    return ((n + m - 1) // m) * m


def _temporal_block_kernel(x_ref, w1_ref, b1_ref, w2_ref, b2_ref, *rest,
                           K, dilation, L, has_mask, has_downsample):
    """Fuses conv1 -> chomp1 -> ReLU -> conv2 -> chomp2 -> ReLU -> (+res) -> ReLU.

    x_ref  : (BL, C_in_pad)            bf16/f32   BL = block_b * L stacked sequences
    w1_ref : (K*C_in_pad,  C_mid_pad)  bf16       im2col-folded conv1 weight
    b1_ref : (1, C_mid_pad)            f32
    w2_ref : (K*C_mid_pad, C_out_pad)  bf16       im2col-folded conv2 weight
    b2_ref : (1, C_out_pad)            f32
    rest   : [wr_ref (C_in_pad, C_out_pad) bf16, br_ref (1, C_out_pad) f32]  (downsample)
             [valid_ref (BL, 1) f32]                                          (mask)
             o_ref (BL, C_out_pad)
    """
    idx = 0
    if has_downsample:
        wr_ref, br_ref = rest[0], rest[1]
        idx = 2
    if has_mask:
        valid_ref = rest[idx]
        idx += 1
    o_ref = rest[idx]

    BL = x_ref.shape[0]
    x = x_ref[...].astype(jnp.float32)      # single upcast; rolls stay on 32-bit path

    # Hoisted causal masks: one per distinct nonzero shift, shared by both convs.
    t = jax.lax.broadcasted_iota(jnp.int32, (BL, 1), 0) % L
    shifts = [(K - 1 - j) * dilation for j in range(K)]
    keep = {s: t >= s for s in set(shifts) if 0 < s < L}

    def shift_down(a, s):
        # Causal shift within each stacked length-L sequence:
        #   out[t] = a[t - s] for t >= s, 0 otherwise.  pltpu.roll wraps across
        #   sequence boundaries; the hoisted (t >= s) mask zeroes those rows.
        if s == 0:
            return a
        if s >= L:
            return jnp.zeros_like(a)
        return jnp.where(keep[s], pltpu.roll(a, shift=s, axis=0), 0.0)

    def causal_im2col(a):
        # Concatenating the K shifted copies along lanes (each a 128-multiple wide =>
        # aligned concat) turns the dilated conv into one lane-dense MXU matmul with
        # contraction depth K * width(a).
        return jnp.concatenate([shift_down(a, s) for s in shifts],
                               axis=1).astype(jnp.bfloat16)

    # --- conv1 + chomp1 + ReLU : single bf16 matmul, f32 accumulation ---------------
    y1 = jnp.maximum(
        jnp.dot(causal_im2col(x), w1_ref[...], preferred_element_type=jnp.float32)
        + b1_ref[...], 0.0)
    if has_mask:
        # TODO(synk): Chomp1d.set_mask source not provided; assumed to zero padded
        # time steps after chomping (matches the reference below).
        y1 = y1 * valid_ref[...]

    # --- conv2 + chomp2 + ReLU (y1 stays in vregs; no scratch round-trip) -----------
    y2 = jnp.maximum(
        jnp.dot(causal_im2col(y1), w2_ref[...], preferred_element_type=jnp.float32)
        + b2_ref[...], 0.0)

    # --- residual: 1x1 weight-norm conv, or direct f32 add when identity ------------
    if has_downsample:
        res = jnp.dot(x_ref[...].astype(jnp.bfloat16), wr_ref[...],
                      preferred_element_type=jnp.float32) + br_ref[...]
    else:
        res = x                      # C_in_pad == C_out_pad; padded lanes are zero

    out = jnp.maximum(y2 + res, 0.0)     # dropouts are identity in eval mode
    if has_mask:
        out = out * valid_ref[...]
    o_ref[...] = out.astype(o_ref.dtype)


def _vmem_limit_bytes(BL, C_in_pad, C_mid_pad, C_out_pad, K, out_itemsize,
                      has_mask, has_downsample):
    # double-buffered io tiles + (conservatively double-buffered) weights + live
    # f32 im2col/y1/res intermediates, with 2x headroom; clamped to [32 MiB, 64 MiB]
    weights = 2 * 2 * (K * C_in_pad * C_mid_pad + K * C_mid_pad * C_out_pad)
    if has_downsample:
        weights += 2 * 2 * C_in_pad * C_out_pad
    io = 2 * BL * C_in_pad * 2 + 2 * BL * C_out_pad * out_itemsize
    if has_mask:
        io += 2 * BL * 128 * 4
    live = BL * (K * C_in_pad + K * C_mid_pad + 2 * C_out_pad) * 4
    est = 2 * (weights + io + live)
    return int(min(max(est, 32 << 20), 64 << 20))


def temporal_block_forward(x_ncl, params, mask=None, block_b=None,
                           out_dtype=jnp.float32):
    """x_ncl: (B, C_in, L) float32. mask: optional bool (B, 1, L), True = padded.
       Returns (B, C_out, L) float32 (matches the PyTorch module's output layout)."""
    B, C_in, L = x_ncl.shape
    w1, b1 = params["conv1"]            # (K, C_in, C_mid), (1, C_mid)
    w2, b2 = params["conv2"]            # (K, C_mid, C_out), (1, C_out)
    dilation = int(params["dilation"])
    K = w1.shape[0]
    C_mid = w1.shape[-1]
    C_out = w2.shape[-1]
    has_downsample = "downsample" in params
    has_mask = mask is not None
    if not has_downsample:
        assert C_in == C_out, "identity residual requires n_inputs == n_outputs"

    # lane-dense padded channel counts (multiples of 128)
    C_in_pad = _round_up(C_in, 128)
    C_mid_pad = _round_up(C_mid, 128)
    C_out_pad = _round_up(C_out, 128)

    # --- fold the K conv taps into single im2col matmul weights (bf16 for the MXU) ---
    w1f = (jnp.zeros((K, C_in_pad, C_mid_pad), jnp.float32)
           .at[:, :C_in, :C_mid].set(w1)
           .reshape(K * C_in_pad, C_mid_pad).astype(jnp.bfloat16))
    b1f = jnp.zeros((1, C_mid_pad), jnp.float32).at[:, :C_mid].set(b1)
    w2f = (jnp.zeros((K, C_mid_pad, C_out_pad), jnp.float32)
           .at[:, :C_mid, :C_out].set(w2)
           .reshape(K * C_mid_pad, C_out_pad).astype(jnp.bfloat16))
    b2f = jnp.zeros((1, C_out_pad), jnp.float32).at[:, :C_out].set(b2)
    if has_downsample:
        wd, bd = params["downsample"]   # (1, C_in, C_out), (1, C_out)
        wr = (jnp.zeros((C_in_pad, C_out_pad), jnp.float32)
              .at[:C_in, :C_out].set(wd[0]).astype(jnp.bfloat16))
        br = jnp.zeros((1, C_out_pad), jnp.float32).at[:, :C_out].set(bd)

    # batch blocking: >= 2 grid steps whenever B >= 2 (v7x has 2 TensorCores and
    # "parallel" can only shard across >= 2 grid points), BL <= 512 rows to bound
    # vreg pressure around the materialized im2col operands.
    if block_b is None:
        divisors = [d for d in range(1, B + 1) if B % d == 0]
        good = [d for d in divisors if d * L <= 512 and B // d >= 2]
        if not good:
            good = [d for d in divisors if d * L <= 512] or [1]
        block_b = max(good)
    assert B % block_b == 0
    BL = block_b * L
    grid = (B // block_b,)
    # TODO(synk): for very long sequences add an L-tiling grid axis with a
    # 2*(K-1)*dilation-row halo (receptive field of BOTH stacked convs) and windowed
    # x reads instead of rolls; not needed at these shapes.

    # activations: (B, C, L) -> stacked (B*L, C_in_pad); bf16 in HBM halves the
    # dominant read (fall back to f32 if BL is not bf16-sublane aligned).
    x_dtype = jnp.bfloat16 if BL % 16 == 0 else jnp.float32
    x_blc = jnp.transpose(x_ncl, (0, 2, 1)).astype(jnp.float32)      # (B, L, C_in)
    if C_in_pad > C_in:
        x_blc = jnp.pad(x_blc, ((0, 0), (0, 0), (0, C_in_pad - C_in)))
    x2d = x_blc.reshape(B * L, C_in_pad).astype(x_dtype)

    in_specs = [
        pl.BlockSpec((BL, C_in_pad), lambda i: (i, 0)),              # x
        pl.BlockSpec((K * C_in_pad, C_mid_pad), lambda i: (0, 0)),   # w1 (im2col)
        pl.BlockSpec((1, C_mid_pad), lambda i: (0, 0)),              # b1
        pl.BlockSpec((K * C_mid_pad, C_out_pad), lambda i: (0, 0)),  # w2 (im2col)
        pl.BlockSpec((1, C_out_pad), lambda i: (0, 0)),              # b2
    ]
    # TODO(synk): mark the grid-invariant weight/bias specs single-buffered
    # (pipeline_mode=pl.Buffered(1)) once verified on the installed Pallas version.
    args = [x2d, w1f, b1f, w2f, b2f]
    if has_downsample:
        in_specs += [pl.BlockSpec((C_in_pad, C_out_pad), lambda i: (0, 0)),  # wr
                     pl.BlockSpec((1, C_out_pad), lambda i: (0, 0))]         # br
        args += [wr, br]
    if has_mask:
        valid = (jnp.where(mask, 0.0, 1.0).astype(jnp.float32)
                 .transpose(0, 2, 1).reshape(B * L, 1))
        in_specs += [pl.BlockSpec((BL, 1), lambda i: (i, 0))]                # valid
        args += [valid]

    kernel = functools.partial(_temporal_block_kernel, K=K, dilation=dilation, L=L,
                               has_mask=has_mask, has_downsample=has_downsample)

    out2d = pl.pallas_call(
        kernel,
        out_shape=jax.ShapeDtypeStruct((B * L, C_out_pad), out_dtype),
        grid_spec=pltpu.PrefetchScalarGridSpec(
            num_scalar_prefetch=0,
            grid=grid,
            in_specs=in_specs,
            out_specs=pl.BlockSpec((BL, C_out_pad), lambda i: (i, 0)),
        ),
        compiler_params=pltpu.CompilerParams(
            dimension_semantics=("parallel",),
            vmem_limit_bytes=_vmem_limit_bytes(
                BL, C_in_pad, C_mid_pad, C_out_pad, K,
                jnp.dtype(out_dtype).itemsize, has_mask, has_downsample),
        ),
    )(*args)

    out = out2d.reshape(B, L, C_out_pad)[:, :, :C_out].astype(jnp.float32)
    # TODO(synk): when chaining TCN blocks keep activations in this (B, L, C) layout
    # (and bf16) and transpose only at the network boundary to save HBM round-trips.
    return jnp.transpose(out, (0, 2, 1))   # back to (B, C_out, L)


# ----------------------------- pure-JAX reference ----------------------------------
def _temporal_block_reference(x_ncl, params, mask=None):
    B, C_in, L = x_ncl.shape
    w1, b1 = params["conv1"]
    w2, b2 = params["conv2"]
    d = int(params["dilation"])
    x = jnp.transpose(x_ncl, (0, 2, 1)).astype(jnp.float32)      # (B, L, C_in)
    if mask is None:
        valid = jnp.ones((B, L, 1), jnp.float32)
    else:
        valid = jnp.where(mask, 0.0, 1.0).astype(jnp.float32).transpose(0, 2, 1)

    def causal_conv(a, w, b):
        Kw = w.shape[0]
        out = jnp.zeros((B, L, w.shape[-1]), jnp.float32)
        for j in range(Kw):
            s = (Kw - 1 - j) * d
            shifted = jnp.pad(a, ((0, 0), (s, 0), (0, 0)))[:, :L, :]
            out = out + jnp.einsum("blc,co->blo", shifted, w[j])
        return out + b

    y1 = jnp.maximum(causal_conv(x, w1, b1), 0.0) * valid
    y2 = jnp.maximum(causal_conv(y1, w2, b2), 0.0)
    if "downsample" in params:
        wd, bd = params["downsample"]
        res = jnp.einsum("blc,co->blo", x, wd[0]) + bd
    else:
        res = x
    out = jnp.maximum(y2 + res, 0.0) * valid
    return jnp.transpose(out, (0, 2, 1))


# ----------------------------- parameter initialization ----------------------------
def _weight_norm_conv_params(key, c_in, c_out, k):
    """Conv1d default init (U(-1/sqrt(c_in*k), +1/sqrt(c_in*k))) wrapped in weight_norm
       (g initialized to ||v|| per output channel, so W == v at init). Returns weights
       in kernel layout (k, c_in, c_out) and bias as (1, c_out)."""
    kv, kb = jax.random.split(key)
    bound = 1.0 / math.sqrt(c_in * k)
    v = jax.random.uniform(kv, (c_out, c_in, k), jnp.float32, -bound, bound)
    norm = jnp.sqrt(jnp.sum(v * v, axis=(1, 2), keepdims=True))
    g = norm  # weight_norm init: g = ||v||
    w = g * v / norm
    b = jax.random.uniform(kb, (c_out,), jnp.float32, -bound, bound)
    return jnp.transpose(w, (2, 1, 0)), b[None, :]


def init_temporal_block_params(key, n_inputs, n_outputs, kernel_size, dilation):
    k1, k2, k3 = jax.random.split(key, 3)
    params = {
        "conv1": _weight_norm_conv_params(k1, n_inputs, n_outputs, kernel_size),
        "conv2": _weight_norm_conv_params(k2, n_outputs, n_outputs, kernel_size),
        "dilation": dilation,
    }
    if n_inputs != n_outputs:
        params["downsample"] = _weight_norm_conv_params(k3, n_inputs, n_outputs, 1)
    return params


if __name__ == "__main__":
    key = jax.random.PRNGKey(0)
    k_pa, k_pb, k_xa, k_xb = jax.random.split(key, 4)

    # Config A: TemporalBlock(4, 8, kernel_size=3, stride=1, dilation=2, padding=4)
    # -> downsample residual branch.
    B, C_in, C_out, L = 2, 4, 8, 16
    kernel_size, dilation = 3, 2
    params_a = init_temporal_block_params(k_pa, C_in, C_out, kernel_size, dilation)
    xa = jax.random.normal(k_xa, (B, C_in, L), jnp.float32)     # PyTorch NCL layout

    out = temporal_block_forward(xa, params_a, mask=None)
    jax.block_until_ready(out)
    assert out.shape == (B, C_out, L)
    ref = _temporal_block_reference(xa, params_a, mask=None)
    err = float(jnp.max(jnp.abs(out - ref)))
    rel = err / (float(jnp.max(jnp.abs(ref))) + 1e-6)
    assert err < 0.08 and rel < 0.08, f"A unmasked err {err} rel {rel}"

    # trailing padding on one batch element
    mask = jnp.zeros((B, 1, L), dtype=bool).at[1, 0, L - 3:].set(True)
    out_m = temporal_block_forward(xa, params_a, mask=mask)
    jax.block_until_ready(out_m)
    ref_m = _temporal_block_reference(xa, params_a, mask=mask)
    err_m = float(jnp.max(jnp.abs(out_m - ref_m)))
    assert err_m < 0.08, f"A masked err {err_m}"

    # Config B: TemporalBlock(8, 8, kernel_size=3, stride=1, dilation=1, padding=2)
    # -> identity residual branch (no downsample, no [I|0] matmul).
    params_b = init_temporal_block_params(k_pb, 8, 8, 3, 1)
    xb = jax.random.normal(k_xb, (B, 8, L), jnp.float32)
    out_b = temporal_block_forward(xb, params_b, mask=None)
    jax.block_until_ready(out_b)
    ref_b = _temporal_block_reference(xb, params_b, mask=None)
    err_b = float(jnp.max(jnp.abs(out_b - ref_b)))
    assert out_b.shape == (B, 8, L)
    assert err_b < 0.08, f"B identity err {err_b}"

    print("KERNEL_OK")
</pallas_src>

<mosaic_0001>
module attributes {stable_mosaic.version = 11 : i64} {
  func.func @_temporal_block_kernel(%arg0: i32, %arg1: memref<16x128xbf16, #tpu.memory_space<vmem>>, %arg2: memref<384x128xbf16, #tpu.memory_space<vmem>>, %arg3: memref<1x128xf32, #tpu.memory_space<vmem>>, %arg4: memref<384x128xbf16, #tpu.memory_space<vmem>>, %arg5: memref<1x128xf32, #tpu.memory_space<vmem>>, %arg6: memref<128x128xbf16, #tpu.memory_space<vmem>>, %arg7: memref<1x128xf32, #tpu.memory_space<vmem>>, %arg8: memref<16x128xf32, #tpu.memory_space<vmem>>) attributes {dimension_semantics = [#tpu.dimension_semantics<parallel>], iteration_bounds = array<i64: 2>, scalar_prefetch = 0 : i64, scratch_operands = 0 : i64, tpu.core_type = #tpu.core_type<tc>, window_params = [{transform_indices = @transform_0, window_bounds = array<i64: 16, 128>}, {pipeline_mode = #tpu.pipeline_mode<synchronous>, transform_indices = @transform_1, window_bounds = array<i64: 384, 128>}, {pipeline_mode = #tpu.pipeline_mode<synchronous>, transform_indices = @transform_2, window_bounds = array<i64: 1, 128>}, {pipeline_mode = #tpu.pipeline_mode<synchronous>, transform_indices = @transform_3, window_bounds = array<i64: 384, 128>}, {pipeline_mode = #tpu.pipeline_mode<synchronous>, transform_indices = @transform_4, window_bounds = array<i64: 1, 128>}, {pipeline_mode = #tpu.pipeline_mode<synchronous>, transform_indices = @transform_5, window_bounds = array<i64: 128, 128>}, {pipeline_mode = #tpu.pipeline_mode<synchronous>, transform_indices = @transform_6, window_bounds = array<i64: 1, 128>}, {transform_indices = @transform_7, window_bounds = array<i64: 16, 128>}]} {
    %c0 = arith.constant 0 : index
    %c0_0 = arith.constant 0 : index
    %0 = vector.load %arg1[%c0, %c0_0] : memref<16x128xbf16, #tpu.memory_space<vmem>>, vector<16x128xbf16>
    %1 = arith.extf %0 : vector<16x128xbf16> to vector<16x128xf32>
    %2 = tpu.iota {dimensions = array<i32: 0>} : vector<16x1xi32>
    %c16_i32 = arith.constant 16 : i32
    %c0_i32 = arith.constant 0 : i32
    %3 = arith.cmpi eq, %c16_i32, %c0_i32 : i32
    %c1_i32 = arith.constant 1 : i32
    %4 = arith.select %3, %c1_i32, %c16_i32 : i32
    %5 = vector.broadcast %4 : i32 to vector<16x1xi32>
    %6 = arith.remsi %2, %5 : vector<16x1xi32>
    %c0_i32_1 = arith.constant 0 : i32
    %7 = vector.broadcast %c0_i32_1 : i32 to vector<16x1xi32>
    %8 = arith.cmpi ne, %6, %7 : vector<16x1xi32>
    %c0_i32_2 = arith.constant 0 : i32
    %9 = vector.broadcast %c0_i32_2 : i32 to vector<16x1xi32>
    %10 = arith.cmpi slt, %6, %9 : vector<16x1xi32>
    %c0_i32_3 = arith.constant 0 : i32
    %11 = arith.cmpi slt, %4, %c0_i32_3 : i32
    %12 = vector.broadcast %11 : i1 to vector<16x1xi1>
    %13 = vector.broadcast %12 : vector<16x1xi1> to vector<16x1xi1>
    %14 = arith.xori %10, %13 : vector<16x1xi1>
    %15 = arith.andi %14, %8 : vector<16x1xi1>
    %16 = vector.broadcast %4 : i32 to vector<16x1xi32>
    %17 = arith.addi %6, %16 : vector<16x1xi32>
    %18 = arith.select %15, %17, %6 : vector<16x1xi1>, vector<16x1xi32>
    %c2_i32 = arith.constant 2 : i32
    %19 = vector.broadcast %c2_i32 : i32 to vector<16x1xi32>
    %20 = arith.cmpi sge, %18, %19 : vector<16x1xi32>
    %c4_i32 = arith.constant 4 : i32
    %21 = vector.broadcast %c4_i32 : i32 to vector<16x1xi32>
    %22 = arith.cmpi sge, %18, %21 : vector<16x1xi32>
    %c4_i32_4 = arith.constant 4 : i32
    %23 = tpu.dynamic_rotate %1 by %c4_i32_4 dim 0 : vector<16x128xf32>, i32 -> vector<16x128xf32>
    %cst = arith.constant 0.000000e+00 : f32
    %24 = vector.shape_cast %22 : vector<16x1xi1> to vector<16x1xi1>
    %25 = vector.broadcast %24 : vector<16x1xi1> to vector<16x128xi1>
    %26 = vector.broadcast %cst : f32 to vector<16x128xf32>
    %27 = arith.select %25, %23, %26 : vector<16x128xi1>, vector<16x128xf32>
    %c2_i32_5 = arith.constant 2 : i32
    %28 = tpu.dynamic_rotate %1 by %c2_i32_5 dim 0 : vector<16x128xf32>, i32 -> vector<16x128xf32>
    %cst_6 = arith.constant 0.000000e+00 : f32
    %29 = vector.shape_cast %20 : vector<16x1xi1> to vector<16x1xi1>
    %30 = vector.broadcast %29 : vector<16x1xi1> to vector<16x128xi1>
    %31 = vector.broadcast %cst_6 : f32 to vector<16x128xf32>
    %32 = arith.select %30, %28, %31 : vector<16x128xi1>, vector<16x128xf32>
    %33 = tpu.concatenate %27, %32, %1 in 1 : vector<16x128xf32>, vector<16x128xf32>, vector<16x128xf32> -> vector<16x384xf32>
    %34 = arith.truncf %33 : vector<16x384xf32> to vector<16x384xbf16>
    %c0_7 = arith.constant 0 : index
    %c0_8 = arith.constant 0 : index
    %35 = vector.load %arg2[%c0_7, %c0_8] : memref<384x128xbf16, #tpu.memory_space<vmem>>, vector<384x128xbf16>
    %cst_9 = arith.constant dense<0.000000e+00> : vector<16x128xf32>
    %36 = tpu.matmul %34, %35, %cst_9 {dimension_numbers = #tpu.dot_dimension_numbers<[1], [0], [0], [1], [0, 0, 1, 1], [], []>} : vector<16x384xbf16>, vector<384x128xbf16>, vector<16x128xf32> -> vector<16x128xf32>
    %c0_10 = arith.constant 0 : index
    %c0_11 = arith.constant 0 : index
    %37 = vector.load %arg3[%c0_10, %c0_11] : memref<1x128xf32, #tpu.memory_space<vmem>>, vector<1x128xf32>
    %38 = vector.broadcast %37 : vector<1x128xf32> to vector<16x128xf32>
    %39 = arith.addf %36, %38 : vector<16x128xf32>
    %cst_12 = arith.constant 0.000000e+00 : f32
    %40 = vector.broadcast %cst_12 : f32 to vector<16x128xf32>
    %41 = arith.maximumf %39, %40 : vector<16x128xf32>
    %c4_i32_13 = arith.constant 4 : i32
    %42 = tpu.dynamic_rotate %41 by %c4_i32_13 dim 0 : vector<16x128xf32>, i32 -> vector<16x128xf32>
    %cst_14 = arith.constant 0.000000e+00 : f32
    %43 = vector.shape_cast %22 : vector<16x1xi1> to vector<16x1xi1>
    %44 = vector.broadcast %43 : vector<16x1xi1> to vector<16x128xi1>
    %45 = vector.broadcast %cst_14 : f32 to vector<16x128xf32>
    %46 = arith.select %44, %42, %45 : vector<16x128xi1>, vector<16x128xf32>
    %c2_i32_15 = arith.constant 2 : i32
    %47 = tpu.dynamic_rotate %41 by %c2_i32_15 dim 0 : vector<16x128xf32>, i32 -> vector<16x128xf32>
    %cst_16 = arith.constant 0.000000e+00 : f32
    %48 = vector.shape_cast %20 : vector<16x1xi1> to vector<16x1xi1>
    %49 = vector.broadcast %48 : vector<16x1xi1> to vector<16x128xi1>
    %50 = vector.broadcast %cst_16 : f32 to vector<16x128xf32>
    %51 = arith.select %49, %47, %50 : vector<16x128xi1>, vector<16x128xf32>
    %52 = tpu.concatenate %46, %51, %41 in 1 : vector<16x128xf32>, vector<16x128xf32>, vector<16x128xf32> -> vector<16x384xf32>
    %53 = arith.truncf %52 : vector<16x384xf32> to vector<16x384xbf16>
    %c0_17 = arith.constant 0 : index
    %c0_18 = arith.constant 0 : index
    %54 = vector.load %arg4[%c0_17, %c0_18] : memref<384x128xbf16, #tpu.memory_space<vmem>>, vector<384x128xbf16>
    %cst_19 = arith.constant dense<0.000000e+00> : vector<16x128xf32>
    %55 = tpu.matmul %53, %54, %cst_19 {dimension_numbers = #tpu.dot_dimension_numbers<[1], [0], [0], [1], [0, 0, 1, 1], [], []>} : vector<16x384xbf16>, vector<384x128xbf16>, vector<16x128xf32> -> vector<16x128xf32>
    %c0_20 = arith.constant 0 : index
    %c0_21 = arith.constant 0 : index
    %56 = vector.load %arg5[%c0_20, %c0_21] : memref<1x128xf32, #tpu.memory_space<vmem>>, vector<1x128xf32>
    %57 = vector.broadcast %56 : vector<1x128xf32> to vector<16x128xf32>
    %58 = arith.addf %55, %57 : vector<16x128xf32>
    %cst_22 = arith.constant 0.000000e+00 : f32
    %59 = vector.broadcast %cst_22 : f32 to vector<16x128xf32>
    %60 = arith.maximumf %58, %59 : vector<16x128xf32>
    %c0_23 = arith.constant 0 : index
    %c0_24 = arith.constant 0 : index
    %61 = vector.load %arg1[%c0_23, %c0_24] : memref<16x128xbf16, #tpu.memory_space<vmem>>, vector<16x128xbf16>
    %c0_25 = arith.constant 0 : index
    %c0_26 = arith.constant 0 : index
    %62 = vector.load %arg6[%c0_25, %c0_26] : memref<128x128xbf16, #tpu.memory_space<vmem>>, vector<128x128xbf16>
    %cst_27 = arith.constant dense<0.000000e+00> : vector<16x128xf32>
    %63 = tpu.matmul %61, %62, %cst_27 {dimension_numbers = #tpu.dot_dimension_numbers<[1], [0], [0], [1], [0, 0, 1, 1], [], []>} : vector<16x128xbf16>, vector<128x128xbf16>, vector<16x128xf32> -> vector<16x128xf32>
    %c0_28 = arith.constant 0 : index
    %c0_29 = arith.constant 0 : index
    %64 = vector.load %arg7[%c0_28, %c0_29] : memref<1x128xf32, #tpu.memory_space<vmem>>, vector<1x128xf32>
    %65 = vector.broadcast %64 : vector<1x128xf32> to vector<16x128xf32>
    %66 = arith.addf %63, %65 : vector<16x128xf32>
    %67 = arith.addf %60, %66 : vector<16x128xf32>
    %cst_30 = arith.constant 0.000000e+00 : f32
    %68 = vector.broadcast %cst_30 : f32 to vector<16x128xf32>
    %69 = arith.maximumf %67, %68 : vector<16x128xf32>
    %c0_31 = arith.constant 0 : index
    %c0_32 = arith.constant 0 : index
    %70 = vector.load %arg8[%c0_31, %c0_32] : memref<16x128xf32, #tpu.memory_space<vmem>>, vector<16x128xf32>
    tpu.vector_store %arg8[%c0_31, %c0_32], %69 {strides = array<i32>} : memref<16x128xf32, #tpu.memory_space<vmem>>, vector<16x128xf32>,
    return
  }
  func.func @transform_0(%arg0: i32) -> (i32, i32) {
    %c0_i32 = arith.constant 0 : i32
    %c0_i32_0 = arith.constant 0 : i32
    return %arg0, %c0_i32 : i32, i32
  }
  func.func @transform_1(%arg0: i32) -> (i32, i32) {
    %c0_i32 = arith.constant 0 : i32
    %c0_i32_0 = arith.constant 0 : i32
    %c0_i32_1 = arith.constant 0 : i32
    return %c0_i32, %c0_i32_0 : i32, i32
  }
  func.func @transform_2(%arg0: i32) -> (i32, i32) {
    %c0_i32 = arith.constant 0 : i32
    %c0_i32_0 = arith.constant 0 : i32
    %c0_i32_1 = arith.constant 0 : i32
    return %c0_i32, %c0_i32_0 : i32, i32
  }
  func.func @transform_3(%arg0: i32) -> (i32, i32) {
    %c0_i32 = arith.constant 0 : i32
    %c0_i32_0 = arith.constant 0 : i32
    %c0_i32_1 = arith.constant 0 : i32
    return %c0_i32, %c0_i32_0 : i32, i32
  }
  func.func @transform_4(%arg0: i32) -> (i32, i32) {
    %c0_i32 = arith.constant 0 : i32
    %c0_i32_0 = arith.constant 0 : i32
    %c0_i32_1 = arith.constant 0 : i32
    return %c0_i32, %c0_i32_0 : i32, i32
  }
  func.func @transform_5(%arg0: i32) -> (i32, i32) {
    %c0_i32 = arith.constant 0 : i32
    %c0_i32_0 = arith.constant 0 : i32
    %c0_i32_1 = arith.constant 0 : i32
    return %c0_i32, %c0_i32_0 : i32, i32
  }
  func.func @transform_6(%arg0: i32) -> (i32, i32) {
    %c0_i32 = arith.constant 0 : i32
    %c0_i32_0 = arith.constant 0 : i32
    %c0_i32_1 = arith.constant 0 : i32
    return %c0_i32, %c0_i32_0 : i32, i32
  }
  func.func @transform_7(%arg0: i32) -> (i32, i32) {
    %c0_i32 = arith.constant 0 : i32
    %c0_i32_0 = arith.constant 0 : i32
    return %arg0, %c0_i32 : i32, i32
  }
}

</mosaic_0001>

<bundles_post_ra>
// kernel: tpu_custom_call.1
= control target key start
LH: loop header
LB: loop body
LE: loop exit
PB: predicated region body
PF: predicated region fallthrough
CT: control target
= control target key end

     0   :  { %12 = vsyncpa [#allocation3], 0  ;;  %s2204_s0 = inlined_call_operand.hbm [shape: bf16[32,128], index: 0, kind: input, shape index: {}]   ;;  %s2205_s1 = inlined_call_operand.hbm [shape: bf16[384,128], index: 1, kind: input, shape index: {}]   ;;  %s2206_s2 = inlined_call_operand.vmem [shape: f32[1,128], index: 2, kind: input, shape index: {}]   ;;  %s2207_s3 = inlined_call_operand.hbm [shape: bf16[384,128], index: 3, kind: input, shape index: {}]   ;;  %s2208_s4 = inlined_call_operand.vmem [shape: f32[1,128], index: 4, kind: input, shape index: {}]   ;;  %s2209_s5 = inlined_call_operand.hbm [shape: bf16[128,128], index: 5, kind: input, shape index: {}]   ;;  %s2210_s6 = inlined_call_operand.vmem [shape: f32[1,128], index: 6, kind: input, shape index: {}]   ;;  %s2211_s7 = inlined_call_operand.hbm [shape: f32[32,128], index: 7, kind: output, shape index: {}]  }
   0x1   :  { %14 = vsyncpa [#allocation3 + $0x1], 0 }
   0x2   :  { %15 = vsyncpa [#allocation6], 0 }
   0x3   :  { %16 = vsyncpa [#allocation9], 0 }
   0x4   :  { %17 = vsyncpa [#allocation4], 0 }
   0x5   :  { %19 = vsyncpa [#allocation4 + $0x1], 0  ;;  %s1835_s24 = smov 0   ;;  %s1837_s25 = smov 0  }
   0x6   :  { %s1839_s26 = smov 0   ;;  %s1841_s27 = smov 0  }
   0x7 LB: > { %s1856_s28 = sadd.s32 4294967295, %s1781_s27   ;;  %s1225_s29 = sadd.s32 4294967294, %s1781_s27   ;;  %s1781_s27 = sphi %s1841_s27, %s2245_s27   ;;  %s1777_s26 = sphi %s1839_s26, %s2244_s26   ;;  %s1773_s25 = sphi %s1837_s25, %s2243_s25   ;;  %s1769_s24 = sphi %s1835_s24, %s2242_s24  }
   0x8   : > { %p45_p0 = scmp.ne.s32.totalorder %s1773_s25, %s1769_s24  ;;  %p2212_p1 = scmp.eq.s32.totalorder %s1856_s28, 0 }
   0x9   : > { %p201_p3 = scmp.eq.s32.totalorder %s1225_s29, 1  ;;  %p1226_p5 = scmp.ge.s32.totalorder %s1781_s27, 1 }
   0xa   : > { %p1865_p4 = por %p2212_p1, %p45_p0  ;;  %p208_p7 = scmp.lt.s32.totalorder %s1781_s27, 3 }
   0xb   : > { %p1870_p6 = por %p201_p3, %p45_p0  ;;  %s1783_s10 = smov [#allocation5]  }
   0xc   : > { %s2216_s30 = scalar_select %p1865_p4, 1, 0 }
   0xd   : > { %s2217_s8 = scalar_select %p1870_p6, 1, 0 }
   0xe   : > { %p1875_p8 = pnand %p1226_p5, %p208_p7  ;;  %s220_s11 = sshll.u32 %s1783_s10, 4  ;;  %s1879_s11 = int_to_ptr.vmem [resolvable:$true] %s220_s11 }
   0xf   : > { %2218 = sst [smem:[#allocation15_spill]] %s2217_s8  ;;  %s1784_s13 = smov [#allocation7]  }
  0x10   : > { %s2219_s9 = scalar_select %p1875_p8, 1, 0 }
  0x11   : > { %p1467_p9 = pneg %p1875_p8  ;;  %s236_s14 = sshll.u32 %s1784_s13, 4  ;;  %s1890_s14 = int_to_ptr.vmem [resolvable:$true] %s236_s14 }
  0x12   : > { %s1785_s15 = smov [#allocation8]   ;;  %s1593_s19 = scalar_lea.hbm %s2205_s1, 3072 }
  0x13   : > { %p1886_p11 = pnand %p1467_p9, %p2212_p1  ;;  %s1892_s16 = sshll.u32 %s1785_s15, 4  ;;  %s253_s16 = int_to_ptr.vmem [resolvable:$true] %s1892_s16 }
  0x14   : > { %p1594_p12 = scmp.ne.s32.totalorder %s2205_s1, %s1593_s19  ;;  %p1600_p5 = scmp.lt.u32.totalorder %s1593_s19, %s2205_s1 }
  0x15   : > { %p1902_p13 = pneg %p1886_p11 }
  0x17   : > { %p1596_p0 = pnand %p1902_p13, %p1594_p12 }
  0x19   : > { %p1597_p3 = pneg %p1596_p0 }
  0x1b   : > { %p1602_p7 = pnand %p1600_p5, %p1597_p3 }
  0x1d   : > { %1605 = shalt.err (!%p1602_p7)
}
  0x1e   : > { %s1606_s10 = scalar_lea.vmem %s1879_s11, 3072  ;;  %p1614_p2 = scmp.lt.s32.totalorder %s1879_s11, %s1879_s11 }
  0x1f   : > { %p1607_p9 = scmp.ne.s32.totalorder %s1879_s11, %s1606_s10  ;;  %p1615_p6 = scmp.lt.s32.totalorder %s1606_s10, %s1606_s10 }
  0x21   : > { %p1609_p10 = pnand %p1607_p9, %p1902_p13  ;;  %p1616_p12 = por %p1615_p6, %p1614_p2 }
  0x23   : > { %p1610_p1 = pneg %p1609_p10 }
  0x25   : > { %p1617_p0 = pnand %p1616_p12, %p1610_p1 }
  0x27   : > { %1620 = shalt.err (!%p1617_p0)
}
  0x28   : > { %s1786_s13 = smov 64   ;;  %s1787_s15 = smov 4  }
  0x29   : > { %1470 = dma.hbm_to_vmem [thread:$0]  (!%p1886_p11), %s2205_s1, 3072, %s1879_s11, [#allocation6], %s1786_s13, %s1786_s13, %s1787_s15  }
  0x2a   : > { %s1621_s21 = scalar_lea.hbm %s2207_s3, 3072 }
  0x2b   : > { %p1622_p1 = scmp.ne.s32.totalorder %s2207_s3, %s1621_s21  ;;  %p1628_p10 = scmp.lt.u32.totalorder %s1621_s21, %s2207_s3 }
  0x2d   : > { %p1624_p2 = pnand %p1622_p1, %p1902_p13 }
  0x2f   : > { %p1625_p6 = pneg %p1624_p2 }
  0x31   : > { %p1630_p3 = pnand %p1628_p10, %p1625_p6 }
  0x33   : > { %1633 = shalt.err (!%p1630_p3)
}
  0x34   : > { %s1634_s11 = scalar_lea.vmem %s1890_s14, 3072  ;;  %p1642_p12 = scmp.lt.s32.totalorder %s1890_s14, %s1890_s14 }
  0x35   : > { %p1635_p5 = scmp.ne.s32.totalorder %s1890_s14, %s1634_s11  ;;  %p1643_p0 = scmp.lt.s32.totalorder %s1634_s11, %s1634_s11 }
  0x37   : > { %p1637_p7 = pnand %p1635_p5, %p1902_p13  ;;  %p1644_p1 = por %p1643_p0, %p1642_p12 }
  0x39   : > { %p1638_p9 = pneg %p1637_p7 }
  0x3b   : > { %p1645_p2 = pnand %p1644_p1, %p1638_p9 }
  0x3d   : > { %1648 = shalt.err (!%p1645_p2)
}
  0x3e   : > { %1473 = dma.hbm_to_vmem [thread:$0]  (!%p1886_p11), %s2207_s3, 3072, %s1890_s14, [#allocation6], %s1786_s13, %s1786_s13, %s1787_s15  }
  0x3f   : > { %s1649_s20 = scalar_lea.hbm %s2209_s5, 1024 }
  0x40   : > { %p1650_p6 = scmp.ne.s32.totalorder %s2209_s5, %s1649_s20  ;;  %p1656_p5 = scmp.lt.u32.totalorder %s1649_s20, %s2209_s5 }
  0x42   : > { %p1652_p10 = pnand %p1650_p6, %p1902_p13 }
  0x44   : > { %p1653_p3 = pneg %p1652_p10 }
  0x46   : > { %p1658_p7 = pnand %p1656_p5, %p1653_p3 }
  0x48   : > { %1661 = shalt.err (!%p1658_p7)
}
  0x49   : > { %s1662_s11 = scalar_lea.vmem %s253_s16, 1024  ;;  %p1670_p1 = scmp.lt.s32.totalorder %s253_s16, %s253_s16 }
  0x4a   : > { %p1663_p9 = scmp.ne.s32.totalorder %s253_s16, %s1662_s11  ;;  %p1671_p2 = scmp.lt.s32.totalorder %s1662_s11, %s1662_s11 }
  0x4c   : > { %p1665_p12 = pnand %p1663_p9, %p1902_p13  ;;  %p1672_p4 = por %p1671_p2, %p1670_p1 }
  0x4e   : > { %p1666_p0 = pneg %p1665_p12 }
  0x50   : > { %p1673_p8 = pnand %p1672_p4, %p1666_p0 }
  0x52   : > { %1676 = shalt.err (!%p1673_p8)
}
  0x53   : > { %1476 = dma.hbm_to_vmem [thread:$0]  (!%p1886_p11), %s2209_s5, 1024, %s253_s16, [#allocation9], %s1786_s13, %s1786_s13, %s1787_s15  }
  0x54   : > { %s1975_s22 = sadd.s32 1, %s1781_s27   ;;  %s32_s17 = sadd.s32 1, %s1777_s26 }
  0x55   : > { %s29_s12 = ssub.s32 %s1781_s27, %s1975_s22  ;;  %p39_p8 = scmp.ne.s32.totalorder %s1777_s26, %s1773_s25 }
  0x56   : > { %p30_p4 = scmp.eq.s32.totalorder %s29_s12, 0  ;;  %p40_p13 = scmp.eq.s32.totalorder %s1781_s27, 0 }
  0x57   : > { %p1488_p6 = scmp.lt.s32.totalorder %s1781_s27, 2  ;;  %p2222_p3 = scmp.eq.s32.totalorder %s1856_s28, 1 }
  0x58   : > { %s1985_s18 = scalar_select %p30_p4, %s1777_s26, %s32_s17  }
  0x59   : > { %p41_p10 = por %p40_p13, %p39_p8  ;;  %p1989_p5 = por %p2222_p3, %p39_p8 }
  0x5a   : > { %s269_s20 = sand.u32 1, %s1777_s26   ;;  %s1318_s21 = sshll.u32 %s1781_s27, 7 }
  0x5b   : > { %s1231_s16 = sshll.u32 %s269_s20, 3  ;;  %s1998_s10 = scalar_lea.hbm %s2204_s0, %s1318_s21 }
  0x5c   : > { %s273_s11 = scalar_lea.vmem [#allocation2], %s1231_s16  ;;  %p2000_p11 = pnand %p1488_p6, %p41_p10 }
  0x5d   : > { %s280_s14 = sshll.u32 %s273_s11, 4  ;;  %s2006_s12 = scalar_lea.sflag [#allocation3], %s269_s20  ;;  %s2004_s14 = int_to_ptr.vmem [resolvable:$true] %s280_s14 }
  0x5e   : > { %s1677_s17 = scalar_lea.hbm %s1998_s10, 128  ;;  %p1679_p9 = pneg %p2000_p11 }
  0x5f   : > { %p1678_p7 = scmp.ne.s32.totalorder %s1998_s10, %s1677_s17  ;;  %s1682_s23 = scalar_lea.hbm %s2204_s0, 256 }
  0x60   : > { %p1683_p1 = scmp.lt.u32.totalorder %s1998_s10, %s2204_s0  ;;  %p1684_p2 = scmp.lt.u32.totalorder %s1682_s23, %s1677_s17 }
  0x61   : > { %p1680_p12 = pnand %p1679_p9, %p1678_p7  ;;  %p1686_p8 = scmp.lt.u32.totalorder %s1677_s17, %s1998_s10 }
  0x62   : > { %p1685_p4 = por %p1684_p2, %p1683_p1 }
  0x63   : > { %p1681_p0 = pneg %p1680_p12 }
  0x64   : > { %p1687_p13 = por %p1686_p8, %p1685_p4 }
  0x66   : > { %p1688_p6 = pnand %p1687_p13, %p1681_p0 }
  0x68   : > { %1691 = shalt.err (!%p1688_p6)
}
  0x69   : > { %s1692_s20 = scalar_lea.vmem %s2004_s14, 128  ;;  %s1788_s21 = smov [#allocation2]  }
  0x6a   : > { %p1693_p10 = scmp.ne.s32.totalorder %s2004_s14, %s1692_s20  ;;  %s1697_s16 = sshll.u32 %s1788_s21, 4  ;;  %s1698_s16 = int_to_ptr.vmem [resolvable:$false] %s1697_s16 }
  0x6b   : > { %s1699_s29 = scalar_lea.vmem %s1698_s16, 256  ;;  %p1700_p12 = scmp.lt.s32.totalorder %s2004_s14, %s1698_s16 }
  0x6c   : > { %p1695_p3 = pnand %p1693_p10, %p1679_p9  ;;  %p1701_p1 = scmp.lt.s32.totalorder %s1699_s29, %s1692_s20 }
  0x6e   : > { %p1696_p7 = pneg %p1695_p3  ;;  %p1702_p2 = por %p1701_p1, %p1700_p12 }
  0x70   : > { %p1703_p4 = pnand %p1702_p2, %p1696_p7 }
  0x72   : > { %1706 = shalt.err (!%p1703_p4)
}
  0x73   : > { %1480 = dma.hbm_to_vmem [thread:$0]  (!%p2000_p11), %s1998_s10, 128, %s2004_s14, %s2006_s12, %s1786_s13, %s1786_s13, %s1787_s15  }
  0x74   : > { %p2225_p9 = scmp.ne.s32.totalorder %s2219_s9, 0 }
  0x75   : > { %s2040_s17 = sand.u32 (!%p2225_p9), 1, %s1773_s25   ;;  %p2226_p0 = scmp.ne.s32.totalorder (!%p2225_p9), %s2216_s30, 0 }
  0x76   : > { %292 = sbr.rel (%p2225_p9) target bundleno = 663 (0x297), region = 48  ;;  %s1235_s23 = sshll.u32 (!%p2225_p9), %s2040_s17, 3 }
  0x77   : > { %s295_s11 = scalar_lea.sflag (!%p2225_p9), [#allocation3], %s2040_s17  ;;  %s2044_s20 = scalar_lea.vmem (!%p2225_p9), [#allocation2], %s1235_s23 }
  0x7d   : > { %1752 = dma.done.wait (%p2226_p0), %s295_s11, 128  }
  0x7e   : > { %1754 = vsyncadd (%p2226_p0), %s295_s11, 4294967168  ;;  %p2227_p11 = scmp.eq.s32.totalorder %s1856_s28, 0 }
  0x80   : > { %1756 = dma.done.wait (%p2227_p11), [#allocation6], 6144   ;;  %p2228_p8 = pmov %p2227_p11 }
  0x82   : > { %1758 = vsyncadd (%p2228_p8), [#allocation6], 4294961152  ;;  %p2229_p13 = pmov %p2228_p8 }
  0x83   : > { %p2230_p6 = pmov %p2228_p8 }
  0x84   : > { %1760 = dma.done.wait (%p2229_p13), [#allocation9], 1024  }
  0x85   : > { %1762 = vsyncadd (%p2230_p6), [#allocation9], 4294966272  ;;  %v1789_v0 = vmov 0.0   ;;  %vm1790_vm0 = vmmov 0   ;;  %v1535_v1 = vld [vmem:[#allocation5 + $0x40] sm:$0xff]   ;;  %v1538_v4 = vld [vmem:[#allocation5 + $0x48] sm:$0xff]   ;;  %v348_v13 = vlaneseq }
  0x86   : > { %1391 = vmatprep.subr.bf16.mxu1 %v1789_v0  ;;  %1407 = vmatprep.mubr.msk.bf16.mxu1 %vm1790_vm0, %v1789_v0  ;;  %v1536_v2 = vld [vmem:[#allocation5] sm:$0xff]   ;;  %v1539_v5 = vld [vmem:[#allocation5 + $0x8] sm:$0xff]   ;;  %v1541_v7 = vld [vmem:[#allocation5 + $0x50] sm:$0xff]   ;;  %vm1791_vm5 = vmmov 1   ;;  %s1239_s10 = sshll.u32 %s2040_s17, 4  ;;  %s1319_s16 = sshll.u32 %s1856_s28, 8 }
  0x87   : > { %1320 = vmatprep.subr.bf16.mxu0 %v1535_v1  ;;  %v1537_v3 = vld [vmem:[#allocation5 + $0x80] sm:$0xff]   ;;  %v1540_v6 = vld [vmem:[#allocation5 + $0x88] sm:$0xff]   ;;  %v1542_v8 = vld [vmem:[#allocation5 + $0x10] sm:$0xff]   ;;  %v2064_v17 = vshrl.u32 %v348_v13, 7  ;;  %s340_s12 = scalar_lea.vmem [#allocation10], %s1239_s10  ;;  %s2160_s11 = scalar_lea.hbm %s2211_s7, %s1319_s16 }
  0x88   : > { %1321 = vmatpush3.bf16.msra.mxu0 %v1536_v2  ;;  %1392 = vmatpush3.bf16.msra.mxu1 %v1537_v3  ;;  %v1543_v9 = vld [vmem:[#allocation5 + $0x90] sm:$0xff]   ;;  %v1544_v10 = vld [vmem:[#allocation5 + $0x58] sm:$0xff]   ;;  %v1547_v14 = vld [vmem:[#allocation5 + $0x60] sm:$0xff]   ;;  %s1123_s21 = sshll.u32 %s340_s12, 4  ;;  %s1792_s28 = smov [#allocation10]   ;;  %s2155_s21 = int_to_ptr.vmem [resolvable:$true] %s1123_s21 }
  0x89   : > { %1322 = vmatprep.subr.bf16.mxu0 %v1538_v4  ;;  %1393 = vmatprep.subr.bf16.mxu1 %v1789_v0  ;;  %v1545_v11 = vld [vmem:[#allocation5 + $0x18] sm:$0xff]   ;;  %v1548_v15 = vld [vmem:[#allocation5 + $0x20] sm:$0xff]   ;;  %v1550_v18 = vld [vmem:[#allocation5 + $0x68] sm:$0xff]   ;;  %v355_v21 = vand.u32 15, %v2064_v17  ;;  %vm392_vm2 = vcmp.lt.s32.totalorder %v2064_v17, 2  ;;  %vm381_vm3 = vcmp.lt.s32.totalorder %v2064_v17, 4 }
  0x8a   : > { %v1546_v12 = vld [vmem:[#allocation5 + $0x98] sm:$0xff]   ;;  %v1549_v16 = vld [vmem:[#allocation5 + $0xa0] sm:$0xff]   ;;  %v1551_v19 = vld [vmem:[#allocation5 + $0x28] sm:$0xff]   ;;  %s1707_s30 = scalar_lea.vmem %s2155_s21, 256  ;;  %s1711_s9 = sshll.u32 %s1792_s28, 4  ;;  %s1712_s9 = int_to_ptr.vmem [resolvable:$false] %s1711_s9 }
  0x8b   : > { %v1552_v20 = vld [vmem:[#allocation5 + $0xa8] sm:$0xff]   ;;  %v1553_v22 = vld [vmem:[#allocation5 + $0x70] sm:$0xff]   ;;  %vm2072_vm1 = vcmp.ge.s32.totalorder %v355_v21, 2  ;;  %v1556_v27 = vld [vmem:[#allocation5 + $0x78] sm:$0xff]   ;;  %vm2081_vm4 = vcmp.ge.s32.totalorder %v355_v21, 4  ;;  %p1708_p10 = scmp.ne.s32.totalorder %s2155_s21, %s1707_s30  ;;  %s1713_s13 = scalar_lea.vmem %s1712_s9, 512 }
  0x8c   : > { %1323 = vmatpush3.bf16.msra.mxu0 %v1539_v5  ;;  %1394 = vmatpush3.bf16.msra.mxu1 %v1540_v6  ;;  %v1554_v23 = vld [vmem:[#allocation5 + $0x30] sm:$0xff]   ;;  %v1557_v30 = vld [vmem:[#allocation5 + $0x38] sm:$0xff]   ;;  %vm2087_vm6 = vmpackc.low %vm1791_vm5, %vm2072_vm1  ;;  %p1714_p12 = scmp.lt.s32.totalorder %s2155_s21, %s1712_s9  ;;  %p1715_p1 = scmp.lt.s32.totalorder %s1713_s13, %s1707_s30 }
  0x8d   : > { %1324 = vmatprep.subr.bf16.mxu0 %v1541_v7  ;;  %1395 = vmatprep.subr.bf16.mxu1 %v1789_v0  ;;  %v2070_v24 = vld [vmem:[%s2044_s20] sm:$0xff]   ;;  %v1561_v41 = vld [vmem:[#allocation7 + $0x40] sm:$0xff]   ;;  %vm2100_vm7 = vmpackc.low %vm1791_vm5, %vm2081_vm4  ;;  %s1110_s20 = scalar_lea.sflag [#allocation4], %s2040_s17  ;;  %p1709_p3 = pnand %p1708_p10, %p1989_p5 }
  0x8e   : > { %v1555_v26 = vld [vmem:[#allocation5 + $0xb0] sm:$0xff]   ;;  %v346_v28 = vunpack.c.l.bf16 %v2070_v24  ;;  %v347_v29 = vunpack.c.h.bf16 %v2070_v24  ;;  %v1558_v37 = vld [vmem:[#allocation5 + $0xb8] sm:$0xff]   ;;  %v1560_v46 = vld [vmem:[#allocation7 + $0x80] sm:$0xff]   ;;  %p1716_p2 = por %p1715_p1, %p1714_p12 }
  0x8f   : > { %v1562_v47 = vld [vmem:[#allocation7] sm:$0xff]   ;;  %v1564_v48 = vld [vmem:[#allocation7 + $0x48] sm:$0xff]   ;;  %v1567_v51 = vld [vmem:[#allocation7 + $0x50] sm:$0xff]   ;;  %p1710_p7 = pneg %p1709_p3 }
  0x90   : > { %1325 = vmatpush3.bf16.msra.mxu0 %v1542_v8  ;;  %1396 = vmatpush3.bf16.msra.mxu1 %v1543_v9  ;;  %v379_v32 = vrot.slane %v346_v28, 4  ;;  %v380_v33 = vrot.slane %v347_v29, 4  ;;  %v390_v34 = vrot.slane %v346_v28, 6  ;;  %v391_v35 = vrot.slane %v347_v29, 6  ;;  %v1563_v49 = vld [vmem:[#allocation7 + $0x88] sm:$0xff]   ;;  %v1568_v52 = vld [vmem:[#allocation7 + $0x10] sm:$0xff]  }
  0x91   : > { %1326 = vmatprep.subr.bf16.mxu0 %v1544_v10  ;;  %1397 = vmatprep.subr.bf16.mxu1 %v1789_v0  ;;  %v1565_v50 = vld [vmem:[#allocation7 + $0x8] sm:$0xff]   ;;  %v1566_v53 = vld [vmem:[#allocation7 + $0x90] sm:$0xff]   ;;  %v1570_v54 = vld [vmem:[#allocation7 + $0x58] sm:$0xff]   ;;  %p1717_p4 = pnand %p1716_p2, %p1710_p7 }
  0x92   : > { %v393_v38 = vsel %vm392_vm2, %v390_v34, %v391_v35  ;;  %v394_v39 = vsel %vm392_vm2, %v391_v35, %v390_v34  ;;  %v382_v40 = vsel %vm381_vm3, %v379_v32, %v380_v33  ;;  %v383_v44 = vsel %vm381_vm3, %v380_v33, %v379_v32  ;;  %v1571_v55 = vld [vmem:[#allocation7 + $0x18] sm:$0xff]   ;;  %v1572_v57 = vld [vmem:[#allocation7 + $0xa0] sm:$0xff]   ;;  %v1575_v60 = vld [vmem:[#allocation7 + $0xa8] sm:$0xff]  }
  0x93   : > { %v1267_v42 = vpack.c.bf16 %v393_v38, %v394_v39  ;;  %v1270_v45 = vpack.c.bf16 %v382_v40, %v383_v44  ;;  %v1569_v56 = vld [vmem:[#allocation7 + $0x98] sm:$0xff]   ;;  %v1573_v58 = vld [vmem:[#allocation7 + $0x60] sm:$0xff]   ;;  %v1576_v61 = vld [vmem:[#allocation7 + $0x68] sm:$0xff]  }
  0x94   : > { %1327 = vmatpush3.bf16.msra.mxu0 %v1545_v11  ;;  %1398 = vmatpush3.bf16.msra.mxu1 %v1546_v12  ;;  %v1574_v59 = vld [vmem:[#allocation7 + $0x20] sm:$0xff]   ;;  %v1577_v62 = vld [vmem:[#allocation7 + $0x28] sm:$0xff]   ;;  %v1578_v63 = vld [vmem:[#allocation7 + $0xb0] sm:$0xff]  }
  0x95   : > { %1328 = vmatprep.subr.bf16.mxu0 %v1547_v14  ;;  %1399 = vmatprep.subr.bf16.mxu1 %v1789_v0  ;;  %v1579_v1 = vld [vmem:[#allocation7 + $0x70] sm:$0xff]   ;;  %v1581_v3 = vld [vmem:[#allocation7 + $0xb8] sm:$0xff]   ;;  %v1585_v38 = vld [vmem:[#allocation8 + $0x8] sm:$0xff]  }
  0x96   : > { %1268 = vmatprep.mubr.msk.bf16.mxu0 %vm2087_vm6, %v1267_v42  ;;  %v1580_v2 = vld [vmem:[#allocation7 + $0x30] sm:$0xff]   ;;  %v1582_v4 = vld [vmem:[#allocation7 + $0x78] sm:$0xff]   ;;  %v1588_v36 = vld [vmem:[#allocation8 + $0x20] sm:$0xff]  }
  0x97   : > { %v1583_v5 = vld [vmem:[#allocation7 + $0x38] sm:$0xff]   ;;  %v1241_v8 = vld [vmem:[%s2206_s2] ss:$0 sm:$0xff]  ;;  %v1589_v40 = vld [vmem:[#allocation8 + $0x28] sm:$0xff]  }
  0x98   : > { %1329 = vmatpush3.bf16.msra.mxu0 %v1548_v15  ;;  %1400 = vmatpush3.bf16.msra.mxu1 %v1549_v16  ;;  %v1586_v39 = vld [vmem:[#allocation8 + $0x10] sm:$0xff]   ;;  %v1587_v17 = vld [vmem:[#allocation8 + $0x18] sm:$0xff]  }
  0x99   : > { %1330 = vmatprep.subr.bf16.mxu0 %v1550_v18  ;;  %1401 = vmatprep.subr.bf16.mxu1 %v1789_v0  ;;  %v1591_v42 = vld [vmem:[#allocation8 + $0x38] sm:$0xff]  }
  0x9c   : > { %1331 = vmatpush3.bf16.msra.mxu0 %v1551_v19  ;;  %1402 = vmatpush3.bf16.msra.mxu1 %v1552_v20 }
  0x9d   : > { %1332 = vmatprep.subr.bf16.mxu0 %v1553_v22  ;;  %1403 = vmatprep.subr.bf16.mxu1 %v1789_v0 }
  0xa0   : > { %1333 = vmatpush3.bf16.msra.mxu0 %v1554_v23  ;;  %1404 = vmatpush3.bf16.msra.mxu1 %v1555_v26 }
  0xa1   : > { %1334 = vmatprep.subr.bf16.mxu0 %v1556_v27  ;;  %1405 = vmatprep.subr.bf16.mxu1 %v1789_v0 }
  0xa4   : > { %1335 = vmatpush3.bf16.msra.mxu0 %v1557_v30  ;;  %1406 = vmatpush3.bf16.msra.mxu1 %v1558_v37  ;;  %v1584_v37 = vld [vmem:[#allocation8] sm:$0xff]  }
  0xa5   : > { %1351 = vmatprep.subr.bf16.mxu0 %v1561_v41  ;;  %1411 = vmatprep.subr.bf16.mxu1 %v1789_v0  ;;  %v1590_v41 = vld [vmem:[#allocation8 + $0x30] sm:$0xff]  }
  0xa7   : > { %1271 = vmatmul.mubr.msk.bf16.vlgmr.msra.gmra.mrb[0].mxu0 %vm2100_vm7, %v1270_v45  ;;  %1408 = vmatmul.mubr.bf16.vlgmr.msra.gmra.mrb[0].mxu1 %v2070_v24 }
  0xa8   : > { %1352 = vmatpush3.bf16.msra.mxu0 %v1562_v47  ;;  %1412 = vmatpush3.bf16.msra.mxu1 %v1560_v46 }
  0xa9   : > { %1353 = vmatprep.subr.bf16.mxu0 %v1564_v48  ;;  %1413 = vmatprep.subr.bf16.mxu1 %v1789_v0  ;;  %v1272_v48 = vld [vmem:[%s2208_s4] ss:$0 sm:$0xff] }
  0xaa   : > { %1427 = vmatprep.mubr.msk.bf16.mxu1 %vm1790_vm0, %v1789_v0 }
  0xac   : > { %1354 = vmatpush3.bf16.msra.mxu0 %v1565_v50  ;;  %1414 = vmatpush3.bf16.msra.mxu1 %v1563_v49 }
  0xad   : > { %1355 = vmatprep.subr.bf16.mxu0 %v1567_v51  ;;  %1415 = vmatprep.subr.bf16.mxu1 %v1789_v0 }
  0xb0   : > { %1356 = vmatpush3.bf16.msra.mxu0 %v1568_v52  ;;  %1416 = vmatpush3.bf16.msra.mxu1 %v1566_v53 }
  0xb1   : > { %1357 = vmatprep.subr.bf16.mxu0 %v1570_v54  ;;  %1417 = vmatprep.subr.bf16.mxu1 %v1789_v0 }
  0xb4   : > { %1358 = vmatpush3.bf16.msra.mxu0 %v1571_v55  ;;  %1418 = vmatpush3.bf16.msra.mxu1 %v1569_v56  ;;  %v1303_v56 = vld [vmem:[%s2210_s6] ss:$0 sm:$0xff] }
  0xb5   : > { %1419 = vmatprep.subr.bf16.mxu1 %v1789_v0  ;;  %1359 = vmatprep.subr.bf16.mxu0 %v1573_v58 }
  0xb8   : > { %1420 = vmatpush3.bf16.msra.mxu1 %v1572_v57  ;;  %1360 = vmatpush3.bf16.msra.mxu0 %v1574_v59 }
  0xb9   : > { %1421 = vmatprep.subr.bf16.mxu1 %v1789_v0  ;;  %1361 = vmatprep.subr.bf16.mxu0 %v1576_v61 }
  0xbc   : > { %1422 = vmatpush3.bf16.msra.mxu1 %v1575_v60  ;;  %1362 = vmatpush3.bf16.msra.mxu0 %v1577_v62 }
  0xbd   : > { %1423 = vmatprep.subr.bf16.mxu1 %v1789_v0  ;;  %1363 = vmatprep.subr.bf16.mxu0 %v1579_v1 }
  0xc0   : > { %1424 = vmatpush3.bf16.msra.mxu1 %v1578_v63  ;;  %1364 = vmatpush3.bf16.msra.mxu0 %v1580_v2 }
  0xc1   : > { %1425 = vmatprep.subr.bf16.mxu1 %v1789_v0  ;;  %1365 = vmatprep.subr.bf16.mxu0 %v1582_v4 }
  0xc4   : > { %1426 = vmatpush3.bf16.msra.mxu1 %v1581_v3  ;;  %1366 = vmatpush3.bf16.msra.mxu0 %v1583_v5 }
  0xc5   : > { %1431 = vmatprep.subr.bf16.mxu0 %v1789_v0 }
 0x17a   : > { %v1336_v6 = vpop.f32.mrb[0].mxu0  ;;  %v678_v9 = vpop.f32.mrb[0].mxu1 }
 0x17b   : > { %v1337_v7 = vpop.f32.mrb[1].mxu0  ;;  %v1409_v12 = vpop.f32.mrb[1].mxu1 }
 0x17c   : > { %v1338_v10 = vadd.f32 %v1337_v7, %v1336_v6  ;;  %v1339_v11 = vpop.f32.mrb[2].mxu0  ;;  %v681_v14 = vpop.f32.mrb[2].mxu1 }
 0x17d   : > { %v1340_v13 = vpop.f32.mrb[3].mxu0  ;;  %v1410_v18 = vpop.f32.mrb[3].mxu1 }
 0x17e   : > { %v638_v15 = vadd.f32 %v1338_v10, %v1241_v8  ;;  %v1341_v16 = vadd.f32 %v1340_v13, %v1339_v11 }
 0x180   : > { %v679_v19 = vadd.f32 %v678_v9, %v638_v15  ;;  %v641_v20 = vadd.f32 %v1341_v16, %v1241_v8 }
 0x182   : > { %v685_v21 = vmax.f32 %v679_v19, 0.0  ;;  %v682_v22 = vadd.f32 %v681_v14, %v641_v20 }
 0x184   : > { %v686_v23 = vmax.f32 %v682_v22, 0.0  ;;  %v687_v25 = vrot.slane %v685_v21, 4  ;;  %v693_v26 = vrot.slane %v685_v21, 6 }
 0x186   : > { %v688_v27 = vrot.slane %v686_v23, 4  ;;  %v694_v28 = vrot.slane %v686_v23, 6  ;;  %v701_v29 = vpack.c.bf16 %v686_v23, %v685_v21 }
 0x188   : > { %v689_v30 = vsel %vm381_vm3, %v687_v25, %v688_v27  ;;  %v690_v31 = vsel %vm381_vm3, %v688_v27, %v687_v25  ;;  %1428 = vmatmul.mubr.bf16.vlgmr.msra.gmra.mrb[4].mxu1 %v701_v29  ;;  %v695_v32 = vsel %vm392_vm2, %v693_v26, %v694_v28  ;;  %v696_v33 = vsel %vm392_vm2, %v694_v28, %v693_v26 }
 0x189   : > { %v1301_v34 = vpack.c.bf16 %v689_v30, %v690_v31  ;;  %v1298_v35 = vpack.c.bf16 %v695_v32, %v696_v33 }
 0x18b   : > { %1299 = vmatprep.mubr.msk.bf16.mxu0 %vm2087_vm6, %v1298_v35 }
 0x18c   : > { %1302 = vmatmul.mubr.msk.bf16.vlgmr.msra.gmra.mrb[4].mxu0 %vm2100_vm7, %v1301_v34 }
 0x18d   : > { %1432 = vmatpush3.bf16.msra.mxu0 %v1584_v37  ;;  %1447 = vmatprep.mubr.msk.bf16.mxu0 %vm1790_vm0, %v1789_v0 }
 0x18e   : > { %1433 = vmatprep.subr.bf16.mxu0 %v1789_v0 }
 0x191   : > { %1434 = vmatpush3.bf16.msra.mxu0 %v1585_v38 }
 0x192   : > { %1435 = vmatprep.subr.bf16.mxu0 %v1789_v0 }
 0x195   : > { %1436 = vmatpush3.bf16.msra.mxu0 %v1586_v39 }
 0x196   : > { %1437 = vmatprep.subr.bf16.mxu0 %v1789_v0 }
 0x199   : > { %1438 = vmatpush3.bf16.msra.mxu0 %v1587_v17 }
 0x19a   : > { %1439 = vmatprep.subr.bf16.mxu0 %v1789_v0 }
 0x19d   : > { %1440 = vmatpush3.bf16.msra.mxu0 %v1588_v36 }
 0x19e   : > { %1441 = vmatprep.subr.bf16.mxu0 %v1789_v0 }
 0x1a1   : > { %1442 = vmatpush3.bf16.msra.mxu0 %v1589_v40 }
 0x1a2   : > { %1443 = vmatprep.subr.bf16.mxu0 %v1789_v0 }
 0x1a5   : > { %1444 = vmatpush3.bf16.msra.mxu0 %v1590_v41 }
 0x1a6   : > { %1445 = vmatprep.subr.bf16.mxu0 %v1789_v0 }
 0x1a9   : > { %1446 = vmatpush3.bf16.msra.mxu0 %v1591_v42 }
 0x1ac   : > { %1448 = vmatmul.mubr.bf16.vlgmr.msra.gmra.mrb[8].mxu0 %v2070_v24 }
 0x25b   : > { %v976_v43 = vpop.f32.mrb[4].mxu1 }
 0x25c   : > { %v1429_v44 = vpop.f32.mrb[5].mxu1 }
 0x25d   : > { %v979_v45 = vpop.f32.mrb[6].mxu1 }
 0x25e   : > { %v1430_v46 = vpop.f32.mrb[7].mxu1 }
 0x25f   : > { %v1367_v47 = vpop.f32.mrb[4].mxu0 }
 0x260   : > { %v1368_v49 = vpop.f32.mrb[5].mxu0 }
 0x261   : > { %v1369_v50 = vadd.f32 %v1368_v49, %v1367_v47  ;;  %v1370_v51 = vpop.f32.mrb[6].mxu0 }
 0x262   : > { %v1371_v52 = vpop.f32.mrb[7].mxu0 }
 0x263   : > { %v936_v53 = vadd.f32 %v1369_v50, %v1272_v48  ;;  %v1372_v54 = vadd.f32 %v1371_v52, %v1370_v51 }
 0x265   : > { %v977_v0 = vadd.f32 %v976_v43, %v936_v53  ;;  %v939_v55 = vadd.f32 %v1372_v54, %v1272_v48 }
 0x267   : > { %v980_v24 = vadd.f32 %v979_v45, %v939_v55  ;;  %v983_v58 = vmax.f32 %v977_v0, 0.0 }
 0x269   : > { %v984_v63 = vmax.f32 %v980_v24, 0.0 }
 0x27f   : > { %v1096_v57 = vpop.f32.mrb[8].mxu0 }
 0x280   : > { %v1097_v59 = vadd.f32 %v1303_v56, %v1096_v57  ;;  %v1449_v60 = vpop.f32.mrb[9].mxu0 }
 0x281   : > { %v1099_v61 = vpop.f32.mrb[10].mxu0 }
 0x282   : > { %v1103_v62 = vadd.f32 %v1097_v59, %v983_v58  ;;  %v1100_v1 = vadd.f32 %v1303_v56, %v1099_v61  ;;  %v1450_v2 = vpop.f32.mrb[11].mxu0 }
 0x284   : > { %v1105_v3 = vmax.f32 %v1103_v62, 0.0  ;;  %v1104_v4 = vadd.f32 %v1100_v1, %v984_v63 }
 0x286   : > { %1107 = vst [vmem:[%s340_s12] sm:$0xff] %v1105_v3  ;;  %v1106_v5 = vmax.f32 %v1104_v4, 0.0 }
 0x288   : > { %1108 = vst [vmem:[%s340_s12 + $0x8] sm:$0xff] %v1106_v5 }
 0x289   : > { %1720 = shalt.err (!%p1717_p4)
}
 0x28a   : > { %s1721_s15 = scalar_lea.hbm %s2160_s11, 256  ;;  %s1725_s8 = scalar_lea.hbm %s2211_s7, 512 }
 0x28b   : > { %p1722_p9 = scmp.ne.s32.totalorder %s2160_s11, %s1721_s15  ;;  %p1726_p8 = scmp.lt.u32.totalorder %s2160_s11, %s2211_s7 }
 0x28c   : > { %p1727_p13 = scmp.lt.u32.totalorder %s1725_s8, %s1721_s15  ;;  %p1729_p10 = scmp.lt.u32.totalorder %s1721_s15, %s2160_s11 }
 0x28d   : > { %p1723_p0 = pnand %p1722_p9, %p1989_p5 }
 0x28e   : > { %p1728_p6 = por %p1727_p13, %p1726_p8 }
 0x28f   : > { %p1724_p11 = pneg %p1723_p0 }
 0x290   : > { %p1730_p3 = por %p1729_p10, %p1728_p6 }
 0x292   : > { %p1731_p7 = pnand %p1730_p3, %p1724_p11 }
 0x294   : > { %1734 = shalt.err (!%p1731_p7)
}
 0x295   : > { %s1793_s29 = smov 128   ;;  %s1794_s23 = smov 8  }
 0x296   : > { %1465 = dma.vmem_to_hbm [thread:$0]  (%p1989_p5), %s2155_s21, 256, %s2160_s11, %s1110_s20, %s1793_s29, %s1793_s29, %s1794_s23  }
 0x297 PF: > { %s2239_s30 = sld [smem:[#allocation15_spill]]  ;;  %s1138_s28 = sand.u32 1, %s1769_s24  }
 0x298   : > { %p2241_p1 = scmp.ge.s32.totalorder %s1781_s27, 2  ;;  %s1139_s9 = scalar_lea.sflag [#allocation4], %s1138_s28 }
 0x29d   : > { %p2240_p12 = scmp.ne.s32.totalorder %s2239_s30, 0 }
 0x29f   : > { %p1482_p2 = pnand %p2241_p1, %p2240_p12 }
 0x2a1   : > { %1764 = dma.done.wait (!%p1482_p2), %s1139_s9, 256  }
 0x2a2   : > { %1766 = vsyncadd (!%p1482_p2), %s1139_s9, 4294967040  ;;  %p22_p4 = scmp.ge.s32.totalorder %s1975_s22, 4   ;;  %s2242_s24 = smov %s1773_s25 }
 0x2a3   : > { %s2243_s25 = smov %s1777_s26  ;;  %s2244_s26 = smov %s1985_s18 }
 0x2a4   : > { %s2245_s27 = smov %s1975_s22  ;;  %24 = sbr.rel (!%p22_p4) target bundleno = 7 (0x7), region = 105 }
 0x2ab   :  { %1144 = vsyncpa [#allocation3], 1 }
 0x2ac   :  { %1146 = vsyncpa [#allocation3 + $0x1], 1 }
 0x2ad   :  { %1147 = vsyncpa [#allocation6], 1 }
 0x2ae   :  { %1148 = vsyncpa [#allocation9], 1 }
 0x2af   :  { %1149 = vsyncpa [#allocation4], 1 }
 0x2b0   :  { %1151 = vsyncpa [#allocation4 + $0x1], 1 }

</bundles_post_ra>
